<compile_context>
chip_gen: v5e
topology: v5e:2x2
jax: 0.10.0
libtpu: 0.0.40
codegen_flags: <defaults>
</compile_context>

<pallas_src>
import functools

import jax
import jax.numpy as jnp
from jax.experimental import pallas as pl
from jax.experimental.pallas import tpu as pltpu


def _round_up(x: int, m: int) -> int:
    return ((x + m - 1) // m) * m


def mlp_kernel(x_ref, w1_ref, b1_ref, w2_ref, b2_ref, o_ref):
    # fc1: [tile_n, in] @ [in, hidden_pad] + [1, hidden_pad]
    h = jnp.dot(x_ref[...], w1_ref[...], preferred_element_type=jnp.float32)
    # bias + ReLU (VPU epilogue)
    h = jnp.maximum(h + b1_ref[...], 0.0)
    # fc2: [tile_n, hidden_pad] @ [hidden_pad, out_pad] + [1, out_pad]
    out = jnp.dot(h.astype(w2_ref.dtype), w2_ref[...],
                  preferred_element_type=jnp.float32)
    o_ref[...] = (out + b2_ref[...]).astype(o_ref.dtype)


@functools.partial(jax.jit, static_argnames=("tile_n",))
def enhanced_node_classifier(x, w1, b1, w2, b2, *, tile_n=512):
    """Fused MLP forward.

    x:  [N, input_dim]
    w1: [input_dim, hidden_dim]   (already transposed vs. torch's [out, in])
    b1: [hidden_dim]
    w2: [hidden_dim, output_dim]
    b2: [output_dim]
    returns [N, output_dim]
    """
    n, in_dim = x.shape
    hidden_dim = w1.shape[1]
    out_dim = w2.shape[1]

    # ---- layout plumbing: pad hidden/out to 128-lane multiples (zeros keep the
    # math identical; MXU pads to 128 lanes anyway so the extra FLOPs are free).
    hidden_pad = _round_up(hidden_dim, 128)
    out_pad = _round_up(out_dim, 128)
    w1p = jnp.pad(w1, ((0, 0), (0, hidden_pad - hidden_dim)))
    b1p = jnp.pad(b1, (0, hidden_pad - hidden_dim)).reshape(1, hidden_pad)
    w2p = jnp.pad(w2, ((0, hidden_pad - hidden_dim), (0, out_pad - out_dim)))
    b2p = jnp.pad(b2, (0, out_pad - out_dim)).reshape(1, out_pad)

    # ---- row tiling: large tiles, clamped to the batch; pad the remainder so
    # no divisibility assert is needed and the last tile is full.
    tile_n_eff = min(tile_n, _round_up(n, 8))     # multiple of 8 sublanes
    n_pad = _round_up(n, tile_n_eff)
    xp = jnp.pad(x, ((0, n_pad - n), (0, 0)))

    grid = (n_pad // tile_n_eff,)

    itemsize = xp.dtype.itemsize
    flops = 2 * n_pad * (in_dim * hidden_pad + hidden_pad * out_pad)
    bytes_accessed = itemsize * (xp.size + w1p.size + b1p.size + w2p.size
                                 + b2p.size + n_pad * out_pad)

    out_padded = pl.pallas_call(
        mlp_kernel,
        out_shape=jax.ShapeDtypeStruct((n_pad, out_pad), x.dtype),
        grid_spec=pltpu.PrefetchScalarGridSpec(
            num_scalar_prefetch=0,
            grid=grid,
            in_specs=[
                # x tile: rows stream over the grid.
                pl.BlockSpec((tile_n_eff, in_dim), lambda i: (i, 0)),
                # Weights/biases: constant block index => fetched once, stay
                # resident in VMEM across grid steps.
                pl.BlockSpec((in_dim, hidden_pad), lambda i: (0, 0)),
                pl.BlockSpec((1, hidden_pad), lambda i: (0, 0)),
                pl.BlockSpec((hidden_pad, out_pad), lambda i: (0, 0)),
                pl.BlockSpec((1, out_pad), lambda i: (0, 0)),
            ],
            # Lane-dense output block (out_pad is a multiple of 128).
            out_specs=pl.BlockSpec((tile_n_eff, out_pad), lambda i: (i, 0)),
        ),
        compiler_params=pltpu.CompilerParams(
            dimension_semantics=("parallel",)),   # batch axis shards across TCs
        cost_estimate=pl.CostEstimate(
            flops=flops, transcendentals=0, bytes_accessed=bytes_accessed),
    )(xp, w1p, b1p, w2p, b2p)

    # Drop row/column padding.
    return out_padded[:n, :out_dim]


def init_linear_params(key, in_features, out_features, dtype=jnp.float32):
    """PyTorch-style uniform init; W returned as [in_features, out_features]."""
    k_w, k_b = jax.random.split(key)
    bound = 1.0 / jnp.sqrt(jnp.asarray(in_features, dtype))
    w = jax.random.uniform(k_w, (in_features, out_features), dtype,
                           minval=-bound, maxval=bound)
    b = jax.random.uniform(k_b, (out_features,), dtype,
                           minval=-bound, maxval=bound)
    return w, b


if __name__ == "__main__":
    # input_dim = 3 + num_classes; pick num_classes = 5 -> input_dim = 8
    num_classes = 5
    input_dim = 3 + num_classes
    hidden_dim = 32
    output_dim = num_classes
    batch = 16  # number of graph nodes (deliberately NOT a multiple of 512)

    root = jax.random.PRNGKey(0)
    k_x, k_fc1, k_fc2 = jax.random.split(root, 3)

    x = jax.random.normal(k_x, (batch, input_dim), jnp.float32)
    w1, b1 = init_linear_params(k_fc1, input_dim, hidden_dim)
    w2, b2 = init_linear_params(k_fc2, hidden_dim, output_dim)

    out = enhanced_node_classifier(x, w1, b1, w2, b2)
    out = jax.block_until_ready(out)

    # Pure-JAX reference check of the fused kernel.
    ref = jnp.maximum(x @ w1 + b1, 0.0) @ w2 + b2
    assert out.shape == (batch, output_dim)
    assert jnp.allclose(out, ref, atol=1e-5, rtol=1e-5)

    print("KERNEL_OK")
</pallas_src>

<mosaic_0001>
module attributes {stable_mosaic.version = 11 : i64} {
  func.func @mlp_kernel(%arg0: i32, %arg1: memref<16x8xf32, #tpu.memory_space<vmem>>, %arg2: memref<8x128xf32, #tpu.memory_space<vmem>>, %arg3: memref<1x128xf32, #tpu.memory_space<vmem>>, %arg4: memref<128x128xf32, #tpu.memory_space<vmem>>, %arg5: memref<1x128xf32, #tpu.memory_space<vmem>>, %arg6: memref<16x128xf32, #tpu.memory_space<vmem>>) attributes {dimension_semantics = [#tpu.dimension_semantics<parallel>], iteration_bounds = array<i64: 1>, scalar_prefetch = 0 : i64, scratch_operands = 0 : i64, tpu.core_type = #tpu.core_type<tc>, window_params = [{transform_indices = @transform_0, window_bounds = array<i64: 16, 8>}, {pipeline_mode = #tpu.pipeline_mode<synchronous>, transform_indices = @transform_1, window_bounds = array<i64: 8, 128>}, {pipeline_mode = #tpu.pipeline_mode<synchronous>, transform_indices = @transform_2, window_bounds = array<i64: 1, 128>}, {pipeline_mode = #tpu.pipeline_mode<synchronous>, transform_indices = @transform_3, window_bounds = array<i64: 128, 128>}, {pipeline_mode = #tpu.pipeline_mode<synchronous>, transform_indices = @transform_4, window_bounds = array<i64: 1, 128>}, {transform_indices = @transform_5, window_bounds = array<i64: 16, 128>}]} {
    %c0 = arith.constant 0 : index
    %c0_0 = arith.constant 0 : index
    %0 = vector.load %arg1[%c0, %c0_0] : memref<16x8xf32, #tpu.memory_space<vmem>>, vector<16x8xf32>
    %c0_1 = arith.constant 0 : index
    %c0_2 = arith.constant 0 : index
    %1 = vector.load %arg2[%c0_1, %c0_2] : memref<8x128xf32, #tpu.memory_space<vmem>>, vector<8x128xf32>
    %cst = arith.constant dense<0.000000e+00> : vector<16x128xf32>
    %2 = tpu.matmul %0, %1, %cst {dimension_numbers = #tpu.dot_dimension_numbers<[1], [0], [0], [1], [0, 0, 1, 1], [], []>} : vector<16x8xf32>, vector<8x128xf32>, vector<16x128xf32> -> vector<16x128xf32>
    %c0_3 = arith.constant 0 : index
    %c0_4 = arith.constant 0 : index
    %3 = vector.load %arg3[%c0_3, %c0_4] : memref<1x128xf32, #tpu.memory_space<vmem>>, vector<1x128xf32>
    %4 = vector.broadcast %3 : vector<1x128xf32> to vector<16x128xf32>
    %5 = arith.addf %2, %4 : vector<16x128xf32>
    %cst_5 = arith.constant 0.000000e+00 : f32
    %6 = vector.broadcast %cst_5 : f32 to vector<16x128xf32>
    %7 = arith.maximumf %5, %6 : vector<16x128xf32>
    %c0_6 = arith.constant 0 : index
    %c0_7 = arith.constant 0 : index
    %8 = vector.load %arg4[%c0_6, %c0_7] : memref<128x128xf32, #tpu.memory_space<vmem>>, vector<128x128xf32>
    %cst_8 = arith.constant dense<0.000000e+00> : vector<16x128xf32>
    %9 = tpu.matmul %7, %8, %cst_8 {dimension_numbers = #tpu.dot_dimension_numbers<[1], [0], [0], [1], [0, 0, 1, 1], [], []>} : vector<16x128xf32>, vector<128x128xf32>, vector<16x128xf32> -> vector<16x128xf32>
    %c0_9 = arith.constant 0 : index
    %c0_10 = arith.constant 0 : index
    %10 = vector.load %arg5[%c0_9, %c0_10] : memref<1x128xf32, #tpu.memory_space<vmem>>, vector<1x128xf32>
    %11 = vector.broadcast %10 : vector<1x128xf32> to vector<16x128xf32>
    %12 = arith.addf %9, %11 : vector<16x128xf32>
    %c0_11 = arith.constant 0 : index
    %c0_12 = arith.constant 0 : index
    %13 = vector.load %arg6[%c0_11, %c0_12] : memref<16x128xf32, #tpu.memory_space<vmem>>, vector<16x128xf32>
    tpu.vector_store %arg6[%c0_11, %c0_12], %12 {strides = array<i32>} : memref<16x128xf32, #tpu.memory_space<vmem>>, vector<16x128xf32>,
    return
  }
  func.func @transform_0(%arg0: i32) -> (i32, i32) {
    %c0_i32 = arith.constant 0 : i32
    %c0_i32_0 = arith.constant 0 : i32
    return %arg0, %c0_i32 : i32, i32
  }
  func.func @transform_1(%arg0: i32) -> (i32, i32) {
    %c0_i32 = arith.constant 0 : i32
    %c0_i32_0 = arith.constant 0 : i32
    %c0_i32_1 = arith.constant 0 : i32
    return %c0_i32, %c0_i32_0 : i32, i32
  }
  func.func @transform_2(%arg0: i32) -> (i32, i32) {
    %c0_i32 = arith.constant 0 : i32
    %c0_i32_0 = arith.constant 0 : i32
    %c0_i32_1 = arith.constant 0 : i32
    return %c0_i32, %c0_i32_0 : i32, i32
  }
  func.func @transform_3(%arg0: i32) -> (i32, i32) {
    %c0_i32 = arith.constant 0 : i32
    %c0_i32_0 = arith.constant 0 : i32
    %c0_i32_1 = arith.constant 0 : i32
    return %c0_i32, %c0_i32_0 : i32, i32
  }
  func.func @transform_4(%arg0: i32) -> (i32, i32) {
    %c0_i32 = arith.constant 0 : i32
    %c0_i32_0 = arith.constant 0 : i32
    %c0_i32_1 = arith.constant 0 : i32
    return %c0_i32, %c0_i32_0 : i32, i32
  }
  func.func @transform_5(%arg0: i32) -> (i32, i32) {
    %c0_i32 = arith.constant 0 : i32
    %c0_i32_0 = arith.constant 0 : i32
    return %arg0, %c0_i32 : i32, i32
  }
}

</mosaic_0001>

<bundles_post_ra>
// kernel: enhanced_node_classifier.1
= control target key start
LH: loop header
LB: loop body
LE: loop exit
PB: predicated region body
PF: predicated region fallthrough
CT: control target
= control target key end

     0   :  { %vm27_vm0 = vcmask 64512   ;;  %s229_s1 = inlined_call_operand.vmem [shape: f32[8,128], index: 1, kind: input, shape index: {}]   ;;  %s230_s0 = inlined_call_operand.vmem [shape: f32[16,8], index: 0, kind: input, shape index: {}]   ;;  %s231_s3 = inlined_call_operand.vmem [shape: f32[128,128], index: 3, kind: input, shape index: {}]   ;;  %s232_s2 = inlined_call_operand.vmem [shape: f32[1,128], index: 2, kind: input, shape index: {}]   ;;  %s233_s4 = inlined_call_operand.vmem [shape: f32[1,128], index: 4, kind: input, shape index: {}]   ;;  %s234_s5 = inlined_call_operand.vmem [shape: f32[16,128], index: 5, kind: output, shape index: {}]  }
   0x1   :  { %v22_v0 = vld [vmem:[%s229_s1] sm:$0xff]  ;;  %v74_v2 = vld [vmem:[%s231_s3 + $0x78] sm:$0xff]  ;;  %v73_v3 = vld [vmem:[%s231_s3 + $0x70] sm:$0xff] }
   0x2   :  { %v20_v1 = vld [vmem:[%s230_s0] sm:$0xff]  ;;  %49 = vmatpush.msra.mxu0 %v22_v0  ;;  %79 = vmatpush.msra.mxu1 %v74_v2  ;;  %v72_v4 = vld [vmem:[%s231_s3 + $0x68] sm:$0xff]  ;;  %v70_v7 = vld [vmem:[%s231_s3 + $0x58] sm:$0xff] }
   0x3   :  { %108 = vmatmul.msk.f32.vlgmr.msra.gmra.mxu0 %vm27_vm0, %v20_v1  ;;  %110 = vmatpush.msra.mxu2 %v74_v2  ;;  %v71_v5 = vld [vmem:[%s231_s3 + $0x60] sm:$0xff]  ;;  %v21_v6 = vld [vmem:[%s230_s0 + $0x8] sm:$0xff]  ;;  %v69_v8 = vld [vmem:[%s231_s3 + $0x50] sm:$0xff] }
   0x4   :  { %80 = vmatpush.msra.mxu1 %v73_v3  ;;  %v68_v9 = vld [vmem:[%s231_s3 + $0x48] sm:$0xff]  ;;  %v67_v10 = vld [vmem:[%s231_s3 + $0x40] sm:$0xff]  ;;  %v66_v11 = vld [vmem:[%s231_s3 + $0x38] sm:$0xff] }
   0x5   :  { %111 = vmatpush.msra.mxu2 %v73_v3  ;;  %v65_v12 = vld [vmem:[%s231_s3 + $0x30] sm:$0xff]  ;;  %v64_v13 = vld [vmem:[%s231_s3 + $0x28] sm:$0xff]  ;;  %v63_v14 = vld [vmem:[%s231_s3 + $0x20] sm:$0xff] }
   0x6   :  { %81 = vmatpush.msra.mxu1 %v72_v4  ;;  %v62_v15 = vld [vmem:[%s231_s3 + $0x18] sm:$0xff]  ;;  %v61_v16 = vld [vmem:[%s231_s3 + $0x10] sm:$0xff]  ;;  %v60_v17 = vld [vmem:[%s231_s3 + $0x8] sm:$0xff] }
   0x7   :  { %112 = vmatpush.msra.mxu2 %v72_v4  ;;  %v59_v18 = vld [vmem:[%s231_s3] sm:$0xff] }
   0x8   :  { %82 = vmatpush.msra.mxu1 %v71_v5  ;;  %v126_v19 = vld [vmem:[%s232_s2] ss:$0 sm:$0xff] }
   0x9   :  { %113 = vmatpush.msra.mxu2 %v71_v5  ;;  %v127_v26 = vld [vmem:[%s233_s4] ss:$0 sm:$0xff] }
   0xa   :  { %83 = vmatpush.msra.mxu1 %v70_v7 }
   0xb   :  { %109 = vmatmul.msk.f32.gmra.mxu0 %vm27_vm0, %v21_v6  ;;  %114 = vmatpush.msra.mxu2 %v70_v7 }
   0xc   :  { %84 = vmatpush.msra.mxu1 %v69_v8 }
   0xd   :  { %115 = vmatpush.msra.mxu2 %v69_v8 }
   0xe   :  { %85 = vmatpush.msra.mxu1 %v68_v9 }
   0xf   :  { %116 = vmatpush.msra.mxu2 %v68_v9 }
  0x10   :  { %86 = vmatpush.msra.mxu1 %v67_v10 }
  0x11   :  { %117 = vmatpush.msra.mxu2 %v67_v10 }
  0x12   :  { %87 = vmatpush.msra.mxu1 %v66_v11 }
  0x13   :  { %118 = vmatpush.msra.mxu2 %v66_v11 }
  0x14   :  { %88 = vmatpush.msra.mxu1 %v65_v12 }
  0x15   :  { %119 = vmatpush.msra.mxu2 %v65_v12 }
  0x16   :  { %89 = vmatpush.msra.mxu1 %v64_v13 }
  0x17   :  { %120 = vmatpush.msra.mxu2 %v64_v13 }
  0x18   :  { %90 = vmatpush.msra.mxu1 %v63_v14 }
  0x19   :  { %121 = vmatpush.msra.mxu2 %v63_v14 }
  0x1a   :  { %91 = vmatpush.msra.mxu1 %v62_v15 }
  0x1b   :  { %122 = vmatpush.msra.mxu2 %v62_v15 }
  0x1c   :  { %92 = vmatpush.msra.mxu1 %v61_v16 }
  0x1d   :  { %123 = vmatpush.msra.mxu2 %v61_v16 }
  0x1e   :  { %93 = vmatpush.msra.mxu1 %v60_v17 }
  0x1f   :  { %124 = vmatpush.msra.mxu2 %v60_v17 }
  0x20   :  { %94 = vmatpush.msra.mxu1 %v59_v18 }
  0x21   :  { %125 = vmatpush.msra.mxu2 %v59_v18 }
  0x80   :  { %v51_v20 = vpop.f32.mrf.mxu0 }
  0x81   :  { %v52_v21 = vadd.f32 %v126_v19, %v51_v20 }
  0x83   :  { %v57_v22 = vmax.f32 %v52_v21, 0.0 }
  0x85   :  { %95 = vmatmul.f32.vlgmr.msra.gmra.mxu1 %v57_v22 }
  0x88   :  { %v54_v23 = vpop.f32.mrf.mxu0 }
  0x89   :  { %v55_v24 = vadd.f32 %v126_v19, %v54_v23 }
  0x8b   :  { %v58_v25 = vmax.f32 %v55_v24, 0.0 }
  0x8d   :  { %98 = vmatmul.f32.vlgmr.msra.gmra.mxu2 %v58_v25 }
 0x102   :  { %v96_v27 = vpop.f32.mrf.mxu1 }
 0x103   :  { %v97_v28 = vadd.f32 %v127_v26, %v96_v27 }
 0x105   :  { %102 = vst [vmem:[%s234_s5] sm:$0xff] %v97_v28 }
 0x110   :  { %v99_v29 = vpop.f32.mrf.mxu2 }
 0x111   :  { %v100_v30 = vadd.f32 %v127_v26, %v99_v29 }
 0x113   :  { %103 = vst [vmem:[%s234_s5 + $0x8] sm:$0xff] %v100_v30 }

</bundles_post_ra>
